<compile_context>
chip_gen: v6e
topology: v6e:2x2x1
jax: 0.10.0
libtpu: 0.0.40
codegen_flags: <defaults>
</compile_context>

<pallas_src>
import numpy as np
import jax
import jax.numpy as jnp
from jax.experimental import pallas as pl
from jax.experimental.pallas import tpu as pltpu


def _conv_as_matmul(k_conv: np.ndarray, H: int, W: int) -> np.ndarray:
    """Bake a 2-in/1-out KxK conv (zero pad, stride 1) into (2, HW, HW) matrices.

    conv_out[p] = sum_c  sa_in[c, :] @ K[c, :, p]
    """
    k = np.asarray(k_conv, dtype=np.float32)          # (2, KH, KW)
    cin, KH, KW = k.shape
    PH, PW = KH // 2, KW // 2
    HW = H * W
    K = np.zeros((cin, HW, HW), dtype=np.float32)
    ys, xs = np.meshgrid(np.arange(H), np.arange(W), indexing="ij")
    p = (ys * W + xs).ravel()
    for dy in range(KH):
        for dx in range(KW):
            yy = ys + dy - PH
            xx = xs + dx - PW
            valid = ((yy >= 0) & (yy < H) & (xx >= 0) & (xx < W)).ravel()
            q = (np.clip(yy, 0, H - 1) * W + np.clip(xx, 0, W - 1)).ravel()
            for c in range(cin):
                K[c, q[valid], p[valid]] += k[c, dy, dx]
    return K


def _make_kernel(HW: int, fusion: str):
    inv_hw = 1.0 / float(HW)

    def kernel(x_ref, m_ref, w1_ref, w2_ref, k0_ref, k1_ref, o_ref):
        # x_ref: (1, C, HW)   m_ref: (1, 1, HW)
        # w1_ref: (Cr, C)  (fc1)   w2_ref: (C, Cr)  (fc2)
        # k0_ref / k1_ref: (HW, HW) conv-as-matmul matrices (avg / max channel)
        x = x_ref[0]                                   # (C, HW)
        m = m_ref[0]                                   # (1, HW)
        xm = x * m                                     # masked features

        # ---------------- channel attention ----------------
        avg_p = jnp.sum(xm, axis=1, keepdims=True) * inv_hw     # (C, 1)
        max_p = jnp.max(xm, axis=1, keepdims=True)              # (C, 1)

        w1 = w1_ref[...]                               # (Cr, C)
        w2 = w2_ref[...]                               # (C, Cr)

        def shared_mlp(v):                             # (C, 1) -> (C, 1), on MXU
            h = jnp.maximum(
                jnp.dot(w1, v, preferred_element_type=jnp.float32), 0.0)   # (Cr, 1)
            return jnp.dot(w2, h, preferred_element_type=jnp.float32)      # (C, 1)

        mc = jax.nn.sigmoid(shared_mlp(avg_p) + shared_mlp(max_p))          # (C, 1)
        x1 = xm * mc                                   # (C, HW)

        # ---------------- spatial attention ----------------
        avg_c = jnp.mean(x1, axis=0, keepdims=True)    # (1, HW)
        max_c = jnp.max(x1, axis=0, keepdims=True)     # (1, HW)
        conv = (jnp.dot(avg_c, k0_ref[...], preferred_element_type=jnp.float32)
                + jnp.dot(max_c, k1_ref[...], preferred_element_type=jnp.float32))
        ms = jax.nn.sigmoid(conv)                      # (1, HW)
        enhanced = x1 * ms                             # F~

        if fusion == "add":
            out = enhanced + x
        else:  # "multiply"
            out = enhanced * x
        o_ref[0] = out.astype(o_ref.dtype)

    return kernel


def mga_cbam_pallas(x, mask, w1, w2, k_conv, *, mga_pyramid_fusion="multiply"):
    """x: (B, C, H, W) f32, mask: (B, 1, H, W) f32.

    w1: (Cr, C)  channel-attention fc1 weight
    w2: (C, Cr)  channel-attention fc2 weight
    k_conv: (2, KH, KW) spatial-attention conv weight (no bias)
    """
    B, C, H, W = x.shape
    HW = H * W
    Cr = w1.shape[0]

    # Lane-dense flattened layout.
    xf = x.reshape(B, C, HW)
    mf = mask.reshape(B, 1, HW)

    kmat = _conv_as_matmul(np.asarray(k_conv, dtype=np.float32), H, W)   # (2, HW, HW)
    k0 = jnp.asarray(kmat[0])
    k1 = jnp.asarray(kmat[1])

    kernel = _make_kernel(HW, mga_pyramid_fusion)

    out = pl.pallas_call(
        kernel,
        out_shape=jax.ShapeDtypeStruct((B, C, HW), x.dtype),
        grid_spec=pltpu.PrefetchScalarGridSpec(
            num_scalar_prefetch=0,
            grid=(B,),
            in_specs=[
                pl.BlockSpec((1, C, HW), lambda b: (b, 0, 0)),
                pl.BlockSpec((1, 1, HW), lambda b: (b, 0, 0)),
                pl.BlockSpec((Cr, C), lambda b: (0, 0)),
                pl.BlockSpec((C, Cr), lambda b: (0, 0)),
                pl.BlockSpec((HW, HW), lambda b: (0, 0)),
                pl.BlockSpec((HW, HW), lambda b: (0, 0)),
            ],
            out_specs=pl.BlockSpec((1, C, HW), lambda b: (b, 0, 0)),
        ),
        compiler_params=pltpu.CompilerParams(
            dimension_semantics=("parallel",)),
    )(xf, mf, w1, w2, k0, k1)

    return out.reshape(B, C, H, W)


def mga_cbam_reference(x, mask, w1, w2, k_conv, *, mga_pyramid_fusion="multiply"):
    """Pure-JAX reference for correctness checking."""
    xm = x * mask
    avg = xm.mean(axis=(2, 3))                       # (B, C)
    mx = xm.max(axis=(2, 3))                         # (B, C)

    def mlp(v):                                      # v: (B, C)
        h = jnp.maximum(v @ w1.T, 0.0)               # (B, Cr)
        return h @ w2.T                              # (B, C)

    mc = jax.nn.sigmoid(mlp(avg) + mlp(mx))[:, :, None, None]
    x1 = xm * mc
    avg_c = x1.mean(axis=1, keepdims=True)
    max_c = x1.max(axis=1, keepdims=True)
    sa_in = jnp.concatenate([avg_c, max_c], axis=1)  # (B, 2, H, W)
    ph, pw = k_conv.shape[1] // 2, k_conv.shape[2] // 2
    conv = jax.lax.conv_general_dilated(
        sa_in, k_conv[None], window_strides=(1, 1),
        padding=((ph, ph), (pw, pw)),
        dimension_numbers=("NCHW", "OIHW", "NCHW"))
    ms = jax.nn.sigmoid(conv)
    enhanced = x1 * ms
    if mga_pyramid_fusion == "add":
        return enhanced + x
    return enhanced * x


if __name__ == "__main__":
    B, C, H, W = 2, 16, 16, 16
    reduction_ratio = 4
    Cr = C // reduction_ratio

    key = jax.random.PRNGKey(0)
    k_x, k_m, k_w1, k_w2, k_conv_key = jax.random.split(key, 5)

    x = jax.random.normal(k_x, (B, C, H, W), dtype=jnp.float32)
    mask = (jax.random.uniform(k_m, (B, 1, H, W)) > 0.5).astype(jnp.float32)

    # Deterministic synthetic parameters (shapes from the module's __init__):
    #   channel-attention MLP: fc1 (Cr, C), fc2 (C, Cr)
    #   spatial-attention conv: (out=1, in=2, 7, 7) -> stored as (2, 7, 7)
    w1 = 0.1 * jax.random.normal(k_w1, (Cr, C), dtype=jnp.float32)
    w2 = 0.1 * jax.random.normal(k_w2, (C, Cr), dtype=jnp.float32)
    k_conv = 0.1 * jax.random.normal(k_conv_key, (2, 7, 7), dtype=jnp.float32)

    out = mga_cbam_pallas(x, mask, w1, w2, k_conv,
                          mga_pyramid_fusion="multiply")
    out = jax.block_until_ready(out)

    ref = mga_cbam_reference(x, mask, w1, w2, k_conv,
                             mga_pyramid_fusion="multiply")
    ref = jax.block_until_ready(ref)

    np.testing.assert_allclose(np.asarray(out), np.asarray(ref),
                               rtol=3e-4, atol=3e-4)
    print("KERNEL_OK")
</pallas_src>

<mosaic_0001>
module attributes {stable_mosaic.version = 11 : i64} {
  func.func @kernel(%arg0: i32, %arg1: memref<1x16x256xf32, #tpu.memory_space<vmem>>, %arg2: memref<1x1x256xf32, #tpu.memory_space<vmem>>, %arg3: memref<4x16xf32, #tpu.memory_space<vmem>>, %arg4: memref<16x4xf32, #tpu.memory_space<vmem>>, %arg5: memref<256x256xf32, #tpu.memory_space<vmem>>, %arg6: memref<256x256xf32, #tpu.memory_space<vmem>>, %arg7: memref<1x16x256xf32, #tpu.memory_space<vmem>>) attributes {dimension_semantics = [#tpu.dimension_semantics<parallel>], iteration_bounds = array<i64: 2>, scalar_prefetch = 0 : i64, scratch_operands = 0 : i64, tpu.core_type = #tpu.core_type<tc>, window_params = [{transform_indices = @transform_0, window_bounds = array<i64: 1, 16, 256>}, {transform_indices = @transform_1, window_bounds = array<i64: 1, 1, 256>}, {pipeline_mode = #tpu.pipeline_mode<synchronous>, transform_indices = @transform_2, window_bounds = array<i64: 4, 16>}, {pipeline_mode = #tpu.pipeline_mode<synchronous>, transform_indices = @transform_3, window_bounds = array<i64: 16, 4>}, {pipeline_mode = #tpu.pipeline_mode<synchronous>, transform_indices = @transform_4, window_bounds = array<i64: 256, 256>}, {pipeline_mode = #tpu.pipeline_mode<synchronous>, transform_indices = @transform_5, window_bounds = array<i64: 256, 256>}, {transform_indices = @transform_6, window_bounds = array<i64: 1, 16, 256>}]} {
    %c0 = arith.constant 0 : index
    %c0_0 = arith.constant 0 : index
    %c0_1 = arith.constant 0 : index
    %0 = vector.load %arg1[%c0, %c0_0, %c0_1] : memref<1x16x256xf32, #tpu.memory_space<vmem>>, vector<1x16x256xf32>
    %1 = vector.shape_cast %0 : vector<1x16x256xf32> to vector<16x256xf32>
    %c0_2 = arith.constant 0 : index
    %c0_3 = arith.constant 0 : index
    %c0_4 = arith.constant 0 : index
    %2 = vector.load %arg2[%c0_2, %c0_3, %c0_4] : memref<1x1x256xf32, #tpu.memory_space<vmem>>, vector<1x1x256xf32>
    %3 = vector.shape_cast %2 : vector<1x1x256xf32> to vector<1x256xf32>
    %4 = vector.broadcast %3 : vector<1x256xf32> to vector<16x256xf32>
    %5 = arith.mulf %1, %4 : vector<16x256xf32>
    %cst = arith.constant dense<0.000000e+00> : vector<16xf32>
    %6 = vector.multi_reduction <add>, %5, %cst [1] : vector<16x256xf32> to vector<16xf32>
    %7 = vector.shape_cast %6 : vector<16xf32> to vector<16x1xf32>
    %cst_5 = arith.constant 3.906250e-03 : f32
    %8 = vector.broadcast %cst_5 : f32 to vector<16x1xf32>
    %9 = arith.mulf %7, %8 : vector<16x1xf32>
    %cst_6 = arith.constant dense<0xFF800000> : vector<16xf32>
    %10 = vector.multi_reduction <maximumf>, %5, %cst_6 [1] : vector<16x256xf32> to vector<16xf32>
    %11 = vector.shape_cast %10 : vector<16xf32> to vector<16x1xf32>
    %c0_7 = arith.constant 0 : index
    %c0_8 = arith.constant 0 : index
    %12 = vector.load %arg3[%c0_7, %c0_8] : memref<4x16xf32, #tpu.memory_space<vmem>>, vector<4x16xf32>
    %c0_9 = arith.constant 0 : index
    %c0_10 = arith.constant 0 : index
    %13 = vector.load %arg4[%c0_9, %c0_10] : memref<16x4xf32, #tpu.memory_space<vmem>>, vector<16x4xf32>
    %cst_11 = arith.constant dense<0.000000e+00> : vector<4x1xf32>
    %14 = tpu.matmul %12, %9, %cst_11 {dimension_numbers = #tpu.dot_dimension_numbers<[1], [0], [0], [1], [0, 0, 1, 1], [], []>} : vector<4x16xf32>, vector<16x1xf32>, vector<4x1xf32> -> vector<4x1xf32>
    %cst_12 = arith.constant 0.000000e+00 : f32
    %15 = vector.broadcast %cst_12 : f32 to vector<4x1xf32>
    %16 = arith.maximumf %14, %15 : vector<4x1xf32>
    %cst_13 = arith.constant dense<0.000000e+00> : vector<16x1xf32>
    %17 = tpu.matmul %13, %16, %cst_13 {dimension_numbers = #tpu.dot_dimension_numbers<[1], [0], [0], [1], [0, 0, 1, 1], [], []>} : vector<16x4xf32>, vector<4x1xf32>, vector<16x1xf32> -> vector<16x1xf32>
    %cst_14 = arith.constant dense<0.000000e+00> : vector<4x1xf32>
    %18 = tpu.matmul %12, %11, %cst_14 {dimension_numbers = #tpu.dot_dimension_numbers<[1], [0], [0], [1], [0, 0, 1, 1], [], []>} : vector<4x16xf32>, vector<16x1xf32>, vector<4x1xf32> -> vector<4x1xf32>
    %cst_15 = arith.constant 0.000000e+00 : f32
    %19 = vector.broadcast %cst_15 : f32 to vector<4x1xf32>
    %20 = arith.maximumf %18, %19 : vector<4x1xf32>
    %cst_16 = arith.constant dense<0.000000e+00> : vector<16x1xf32>
    %21 = tpu.matmul %13, %20, %cst_16 {dimension_numbers = #tpu.dot_dimension_numbers<[1], [0], [0], [1], [0, 0, 1, 1], [], []>} : vector<16x4xf32>, vector<4x1xf32>, vector<16x1xf32> -> vector<16x1xf32>
    %22 = arith.addf %17, %21 : vector<16x1xf32>
    %23 = arith.negf %22 : vector<16x1xf32>
    %24 = math.exp %23 : vector<16x1xf32>
    %cst_17 = arith.constant 1.000000e+00 : f32
    %25 = vector.broadcast %cst_17 : f32 to vector<16x1xf32>
    %26 = arith.addf %25, %24 : vector<16x1xf32>
    %27 = arith.divf %25, %26 : vector<16x1xf32>
    %28 = vector.broadcast %27 : vector<16x1xf32> to vector<16x256xf32>
    %29 = arith.mulf %5, %28 : vector<16x256xf32>
    %cst_18 = arith.constant dense<0.000000e+00> : vector<256xf32>
    %30 = vector.multi_reduction <add>, %29, %cst_18 [0] : vector<16x256xf32> to vector<256xf32>
    %31 = vector.shape_cast %30 : vector<256xf32> to vector<1x256xf32>
    %cst_19 = arith.constant 1.600000e+01 : f32
    %32 = vector.broadcast %cst_19 : f32 to vector<1x256xf32>
    %33 = arith.divf %31, %32 : vector<1x256xf32>
    %cst_20 = arith.constant dense<0xFF800000> : vector<256xf32>
    %34 = vector.multi_reduction <maximumf>, %29, %cst_20 [0] : vector<16x256xf32> to vector<256xf32>
    %35 = vector.shape_cast %34 : vector<256xf32> to vector<1x256xf32>
    %c0_21 = arith.constant 0 : index
    %c0_22 = arith.constant 0 : index
    %36 = vector.load %arg5[%c0_21, %c0_22] : memref<256x256xf32, #tpu.memory_space<vmem>>, vector<256x256xf32>
    %cst_23 = arith.constant dense<0.000000e+00> : vector<1x256xf32>
    %37 = tpu.matmul %33, %36, %cst_23 {dimension_numbers = #tpu.dot_dimension_numbers<[1], [0], [0], [1], [0, 0, 1, 1], [], []>} : vector<1x256xf32>, vector<256x256xf32>, vector<1x256xf32> -> vector<1x256xf32>
    %c0_24 = arith.constant 0 : index
    %c0_25 = arith.constant 0 : index
    %38 = vector.load %arg6[%c0_24, %c0_25] : memref<256x256xf32, #tpu.memory_space<vmem>>, vector<256x256xf32>
    %cst_26 = arith.constant dense<0.000000e+00> : vector<1x256xf32>
    %39 = tpu.matmul %35, %38, %cst_26 {dimension_numbers = #tpu.dot_dimension_numbers<[1], [0], [0], [1], [0, 0, 1, 1], [], []>} : vector<1x256xf32>, vector<256x256xf32>, vector<1x256xf32> -> vector<1x256xf32>
    %40 = arith.addf %37, %39 : vector<1x256xf32>
    %41 = arith.negf %40 : vector<1x256xf32>
    %42 = math.exp %41 : vector<1x256xf32>
    %cst_27 = arith.constant 1.000000e+00 : f32
    %43 = vector.broadcast %cst_27 : f32 to vector<1x256xf32>
    %44 = arith.addf %43, %42 : vector<1x256xf32>
    %45 = arith.divf %43, %44 : vector<1x256xf32>
    %46 = vector.broadcast %45 : vector<1x256xf32> to vector<16x256xf32>
    %47 = arith.mulf %29, %46 : vector<16x256xf32>
    %48 = arith.mulf %47, %1 : vector<16x256xf32>
    %c0_28 = arith.constant 0 : index
    %c0_29 = arith.constant 0 : index
    %c0_30 = arith.constant 0 : index
    %49 = vector.load %arg7[%c0_28, %c0_29, %c0_30] : memref<1x16x256xf32, #tpu.memory_space<vmem>>, vector<1x16x256xf32>
    %50 = vector.shape_cast %49 : vector<1x16x256xf32> to vector<16x256xf32>
    %51 = vector.shape_cast %48 : vector<16x256xf32> to vector<1x16x256xf32>
    tpu.vector_store %arg7[%c0_28, %c0_29, %c0_30], %51 {strides = array<i32>} : memref<1x16x256xf32, #tpu.memory_space<vmem>>, vector<1x16x256xf32>,
    return
  }
  func.func @transform_0(%arg0: i32) -> (i32, i32, i32) {
    %c0_i32 = arith.constant 0 : i32
    %c0_i32_0 = arith.constant 0 : i32
    %c0_i32_1 = arith.constant 0 : i32
    return %arg0, %c0_i32, %c0_i32_0 : i32, i32, i32
  }
  func.func @transform_1(%arg0: i32) -> (i32, i32, i32) {
    %c0_i32 = arith.constant 0 : i32
    %c0_i32_0 = arith.constant 0 : i32
    %c0_i32_1 = arith.constant 0 : i32
    return %arg0, %c0_i32, %c0_i32_0 : i32, i32, i32
  }
  func.func @transform_2(%arg0: i32) -> (i32, i32) {
    %c0_i32 = arith.constant 0 : i32
    %c0_i32_0 = arith.constant 0 : i32
    %c0_i32_1 = arith.constant 0 : i32
    return %c0_i32, %c0_i32_0 : i32, i32
  }
  func.func @transform_3(%arg0: i32) -> (i32, i32) {
    %c0_i32 = arith.constant 0 : i32
    %c0_i32_0 = arith.constant 0 : i32
    %c0_i32_1 = arith.constant 0 : i32
    return %c0_i32, %c0_i32_0 : i32, i32
  }
  func.func @transform_4(%arg0: i32) -> (i32, i32) {
    %c0_i32 = arith.constant 0 : i32
    %c0_i32_0 = arith.constant 0 : i32
    %c0_i32_1 = arith.constant 0 : i32
    return %c0_i32, %c0_i32_0 : i32, i32
  }
  func.func @transform_5(%arg0: i32) -> (i32, i32) {
    %c0_i32 = arith.constant 0 : i32
    %c0_i32_0 = arith.constant 0 : i32
    %c0_i32_1 = arith.constant 0 : i32
    return %c0_i32, %c0_i32_0 : i32, i32
  }
  func.func @transform_6(%arg0: i32) -> (i32, i32, i32) {
    %c0_i32 = arith.constant 0 : i32
    %c0_i32_0 = arith.constant 0 : i32
    %c0_i32_1 = arith.constant 0 : i32
    return %arg0, %c0_i32, %c0_i32_0 : i32, i32, i32
  }
}

</mosaic_0001>

<bundles_post_ra>
// kernel: tpu_custom_call.1
= control target key start
LH: loop header
LB: loop body
LE: loop exit
PB: predicated region body
PF: predicated region fallthrough
CT: control target
= control target key end

     0   :  { %11 = vsyncpa [#allocation3], 0  ;;  %s1762_s0 = inlined_call_operand.hbm [shape: f32[2,16,256], index: 0, kind: input, shape index: {}]   ;;  %s1763_s1 = inlined_call_operand.vmem [shape: f32[2,1,256], index: 1, kind: input, shape index: {}]   ;;  %s1764_s2 = inlined_call_operand.vmem [shape: f32[4,16], index: 2, kind: input, shape index: {}]   ;;  %s1765_s3 = inlined_call_operand.vmem [shape: f32[16,4], index: 3, kind: input, shape index: {}]   ;;  %s1766_s4 = inlined_call_operand.hbm [shape: f32[256,256], index: 4, kind: input, shape index: {}]   ;;  %s1767_s5 = inlined_call_operand.hbm [shape: f32[256,256], index: 5, kind: input, shape index: {}]   ;;  %s1768_s6 = inlined_call_operand.hbm [shape: f32[2,16,256], index: 6, kind: output, shape index: {}]  }
   0x1   :  { %13 = vsyncpa [#allocation3 + $0x1], 0 }
   0x2   :  { %14 = vsyncpa [#allocation6], 0 }
   0x3   :  { %15 = vsyncpa [#allocation4], 0 }
   0x4   :  { %17 = vsyncpa [#allocation4 + $0x1], 0  ;;  %s1497_s21 = smov 0   ;;  %s1499_s22 = smov 0  }
   0x5   :  { %s1501_s23 = smov 0   ;;  %s1503_s24 = smov 0  }
   0x6 LB: > { %s1518_s25 = sadd.s32 4294967295, %s1449_s24   ;;  %s1140_s26 = sadd.s32 4294967294, %s1449_s24   ;;  %s1449_s24 = sphi %s1503_s24, %s1793_s24   ;;  %s1445_s23 = sphi %s1501_s23, %s1792_s23   ;;  %s1441_s22 = sphi %s1499_s22, %s1791_s22   ;;  %s1437_s21 = sphi %s1497_s21, %s1790_s21  }
   0x7   : > { %p43_p0 = scmp.ne.s32.totalorder %s1441_s22, %s1437_s21  ;;  %p1769_p1 = scmp.eq.s32.totalorder %s1518_s25, 0 }
   0x8   : > { %p177_p2 = scmp.eq.s32.totalorder %s1518_s25, 1  ;;  %p183_p3 = scmp.eq.s32.totalorder %s1140_s26, 1 }
   0x9   : > { %p1527_p4 = por %p1769_p1, %p43_p0  ;;  %p1141_p5 = scmp.ge.s32.totalorder %s1449_s24, 1 }
   0xa   : > { %p1532_p6 = por %p183_p3, %p43_p0  ;;  %p190_p7 = scmp.lt.s32.totalorder %s1449_s24, 3 }
   0xb   : > { %s1775_s27 = scalar_select %p1527_p4, 1, 0 }
   0xc   : > { %s1776_s28 = scalar_select %p1532_p6, 1, 0 }
   0xd   : > { %p1537_p8 = pnand %p1141_p5, %p190_p7  ;;  %s1451_s30 = smov [#allocation5]  }
   0xe   : > { %s208_s7 = sshll.u32 %s1451_s30, 4  ;;  %s1452_s9 = smov [#allocation7]   ;;  %s209_s7 = int_to_ptr.vmem [resolvable:$true] %s208_s7 }
   0xf   : > { %s1777_s29 = scalar_select %p1537_p8, 1, 0 }
  0x10   : > { %p1221_p9 = pneg %p1537_p8  ;;  %s221_s10 = sshll.u32 %s1452_s9, 4  ;;  %s222_s10 = int_to_ptr.vmem [resolvable:$true] %s221_s10 }
  0x11   : > { %s1312_s11 = scalar_lea.vmem %s209_s7, 8192  ;;  %p1320_p5 = scmp.lt.s32.totalorder %s209_s7, %s209_s7 }
  0x12   : > { %p1546_p11 = pnand %p1221_p9, %p1769_p1  ;;  %p1313_p13 = scmp.ne.s32.totalorder %s209_s7, %s1312_s11 }
  0x13   : > { %p1321_p7 = scmp.lt.s32.totalorder %s1312_s11, %s1312_s11 }
  0x14   : > { %p1303_p12 = pneg %p1546_p11 }
  0x15   : > { %p1322_p10 = por %p1321_p7, %p1320_p5 }
  0x16   : > { %p1315_p0 = pnand %p1313_p13, %p1303_p12 }
  0x18   : > { %p1316_p3 = pneg %p1315_p0 }
  0x1a   : > { %p1323_p9 = pnand %p1322_p10, %p1316_p3 }
  0x1c   : > { %1326 = shalt.err (!%p1323_p9)
}
  0x1d   : > { %s1770_s12 = smov 256   ;;  %s1771_s13 = smov 16  }
  0x1e   : > { %1224 = dma.hbm_to_vmem [thread:$0]  (!%p1546_p11), %s1766_s4, 8192, %s209_s7, [#allocation6], %s1770_s12, %s1770_s12, %s1771_s13  }
  0x1f   : > { %s1338_s16 = scalar_lea.vmem %s222_s10, 8192  ;;  %p1346_p10 = scmp.lt.s32.totalorder %s222_s10, %s222_s10 }
  0x20   : > { %p1339_p13 = scmp.ne.s32.totalorder %s222_s10, %s1338_s16  ;;  %p1347_p3 = scmp.lt.s32.totalorder %s1338_s16, %s1338_s16 }
  0x22   : > { %p1341_p0 = pnand %p1339_p13, %p1303_p12  ;;  %p1348_p7 = por %p1347_p3, %p1346_p10 }
  0x24   : > { %p1342_p5 = pneg %p1341_p0 }
  0x26   : > { %p1349_p9 = pnand %p1348_p7, %p1342_p5 }
  0x28   : > { %1352 = shalt.err (!%p1349_p9)
}
  0x29   : > { %1227 = dma.hbm_to_vmem [thread:$0]  (!%p1546_p11), %s1767_s5, 8192, %s222_s10, [#allocation6], %s1770_s12, %s1770_s12, %s1771_s13  }
  0x2a   : > { %s1575_s19 = sadd.s32 1, %s1449_s24   ;;  %s30_s20 = sadd.s32 1, %s1445_s23 }
  0x2b   : > { %s27_s26 = ssub.s32 %s1449_s24, %s1575_s19  ;;  %p37_p12 = scmp.ne.s32.totalorder %s1445_s23, %s1441_s22 }
  0x2c   : > { %p28_p13 = scmp.eq.s32.totalorder %s27_s26, 0  ;;  %p38_p0 = scmp.eq.s32.totalorder %s1449_s24, 0 }
  0x2d   : > { %p1585_p5 = por %p177_p2, %p37_p12  ;;  %p1238_p10 = scmp.lt.s32.totalorder %s1449_s24, 2 }
  0x2e   : > { %s1591_s7 = scalar_select %p28_p13, %s1445_s23, %s30_s20  }
  0x2f   : > { %s1779_s30 = scalar_select %p1585_p5, 1, 0 }
  0x30   : > { %p39_p3 = por %p38_p0, %p37_p12  ;;  %s235_s8 = sand.u32 1, %s1445_s23  }
  0x31   : > { %s1145_s9 = sshll.u32 %s235_s8, 5  ;;  %s1171_s10 = sshll.u32 %s1449_s24, 9 }
  0x32   : > { %s1598_s15 = scalar_lea.hbm %s1762_s0, %s1171_s10  ;;  %s239_s16 = scalar_lea.vmem [#allocation2], %s1145_s9 }
  0x33   : > { %s246_s17 = sshll.u32 %s239_s16, 4  ;;  %p1602_p2 = pnand %p1238_p10, %p39_p3  ;;  %s1600_s17 = int_to_ptr.vmem [resolvable:$true] %s246_s17 }
  0x34   : > { %s1606_s20 = scalar_lea.sflag [#allocation3], %s235_s8  ;;  %s1353_s26 = scalar_lea.hbm %s1598_s15, 512 }
  0x35   : > { %p1354_p11 = scmp.ne.s32.totalorder %s1598_s15, %s1353_s26  ;;  %p1355_p7 = pneg %p1602_p2 }
  0x36   : > { %s1358_s9 = scalar_lea.hbm %s1762_s0, 1024  ;;  %p1359_p13 = scmp.lt.s32.totalorder %s1598_s15, %s1762_s0 }
  0x37   : > { %p1356_p9 = pnand %p1355_p7, %p1354_p11  ;;  %p1360_p0 = scmp.lt.s32.totalorder %s1358_s9, %s1353_s26 }
  0x39   : > { %p1357_p12 = pneg %p1356_p9  ;;  %p1361_p10 = por %p1360_p0, %p1359_p13 }
  0x3b   : > { %p1362_p3 = pnand %p1361_p10, %p1357_p12 }
  0x3d   : > { %1365 = shalt.err (!%p1362_p3)
}
  0x3e   : > { %s1366_s8 = scalar_lea.vmem %s1600_s17, 512  ;;  %s1455_s12 = smov [#allocation2]  }
  0x3f   : > { %p1367_p1 = scmp.ne.s32.totalorder %s1600_s17, %s1366_s8  ;;  %s1371_s13 = sshll.u32 %s1455_s12, 4  ;;  %s1372_s13 = int_to_ptr.vmem [resolvable:$false] %s1371_s13 }
  0x40   : > { %s1373_s10 = scalar_lea.vmem %s1372_s13, 1024  ;;  %p1374_p9 = scmp.lt.s32.totalorder %s1600_s17, %s1372_s13 }
  0x41   : > { %p1369_p6 = pnand %p1367_p1, %p1355_p7  ;;  %p1375_p5 = scmp.lt.s32.totalorder %s1373_s10, %s1366_s8 }
  0x43   : > { %p1370_p11 = pneg %p1369_p6  ;;  %p1376_p4 = por %p1375_p5, %p1374_p9 }
  0x45   : > { %p1377_p8 = pnand %p1376_p4, %p1370_p11 }
  0x47   : > { %1380 = shalt.err (!%p1377_p8)
}
  0x48   : > { %s1781_s26 = smov 16   ;;  %s1782_s11 = smov 256  }
  0x49   : > { %1231 = dma.hbm_to_vmem [thread:$0]  (!%p1602_p2), %s1598_s15, 512, %s1600_s17, %s1606_s20, %s1782_s11, %s1782_s11, %s1781_s26  }
  0x4a   : > { %p1783_p1 = scmp.ne.s32.totalorder %s1777_s29, 0 }
  0x4b   : > { %s1633_s12 = sand.u32 (!%p1783_p1), 1, %s1441_s22   ;;  %p1784_p4 = scmp.ne.s32.totalorder (!%p1783_p1), %s1775_s27, 0 }
  0x4c   : > { %265 = sbr.rel (%p1783_p1) target bundleno = 1061 (0x425), region = 44  ;;  %s1149_s13 = sshll.u32 (!%p1783_p1), %s1633_s12, 5 }
  0x4d   : > { %s268_s9 = scalar_lea.sflag (!%p1783_p1), [#allocation3], %s1633_s12  ;;  %s271_s18 = scalar_lea.vmem (!%p1783_p1), [#allocation2], %s1149_s13 }
  0x51   : > { %1424 = dma.done.wait (%p1784_p4), %s268_s9, 512  }
  0x52   : > { %1426 = vsyncadd (%p1784_p4), %s268_s9, 4294966784  ;;  %p1785_p6 = scmp.eq.s32.totalorder %s1518_s25, 0 }
  0x54   : > { %1428 = dma.done.wait (%p1785_p6), [#allocation6], 16384   ;;  %p1786_p8 = pmov %p1785_p6 }
  0x55   : > { %p312_p5 = scmp.lt.s32.totalorder %s1518_s25, 1  ;;  %v322_v0 = vlaneseq  ;;  %v1654_v4 = vld [vmem:[%s271_s18 + $0x10] sm:$0xff]  ;;  %v1656_v5 = vld [vmem:[%s271_s18 + $0x18] sm:$0xff]  ;;  %v1659_v9 = vld [vmem:[%s271_s18] sm:$0xff]  ;;  %v1456_v19 = vmov 0.0   ;;  %vm1457_vm0 = vmmov 0  }
  0x56   : > { %1430 = vsyncadd (%p1786_p8), [#allocation6], 4294950912  ;;  %v1661_v10 = vld [vmem:[%s271_s18 + $0x8] sm:$0xff]  ;;  %1185 = vmatprep.subr.mxu0 %v1456_v19  ;;  %1192 = vmatprep.subr.mxu1 %v1456_v19  ;;  %v350_v23 = vld [vmem:[%s1764_s2] sm:$0xf]  ;;  %vm353_vm1 = vcmask 130048  }
  0x57   : > { %s313_s29 = scalar_select %p312_p5, %s1518_s25, 1  ;;  %v323_v1 = vshrl.u32 %v322_v0, 7  ;;  %1196 = vmatprep.mubr.msk.f32.mxu1 %vm1457_vm0, %v1456_v19  ;;  %1189 = vmatprep.mubr.msk.f32.mxu0 %vm1457_vm0, %v1456_v19  ;;  %v351_v27 = vld [vmem:[%s1765_s3] sm:$0xff]  ;;  %vm499_vm2 = vcmask 31744   ;;  %vm506_vm3 = vcmask 1043456   ;;  %v352_v32 = vld [vmem:[%s1765_s3 + $0x8] sm:$0xff] }
  0x58   : > { %v1458_v35 = vmov 0   ;;  %v815_v36 = vld [vmem:[#allocation7 + $0xf8] sm:$0xff]  ;;  %v814_v37 = vld [vmem:[#allocation7 + $0xf0] sm:$0xff]  ;;  %v813_v38 = vld [vmem:[#allocation7 + $0xe8] sm:$0xff]  ;;  %s1172_s9 = sshll.u32 %s1518_s25, 9  ;;  %s311_s18 = scalar_lea.vmem [#allocation8], %s1149_s13 }
  0x59   : > { %s1153_s15 = sshll.u32 %s313_s29, 1  ;;  %v1649_v2 = vsub.s32 0, %v323_v1  ;;  %v328_v3 = vsub.s32 1, %v323_v1  ;;  %1284 = vset.pattern.permute.xlu1 %v1458_v35  ;;  %1283 = vset.pattern.permute.xlu0 %v1458_v35  ;;  %v751_v39 = vld [vmem:[#allocation5 + $0xf8] sm:$0xff]  ;;  %v812_v40 = vld [vmem:[#allocation7 + $0xe0] sm:$0xff]  ;;  %v750_v41 = vld [vmem:[#allocation5 + $0xf0] sm:$0xff]  ;;  %s1715_s20 = scalar_lea.hbm %s1768_s6, %s1172_s9 }
  0x5a   : > { %s315_s27 = scalar_lea.vmem %s1763_s1, %s1153_s15  ;;  %v811_v42 = vld [vmem:[#allocation7 + $0xd8] sm:$0xff]  ;;  %v749_v43 = vld [vmem:[#allocation5 + $0xe8] sm:$0xff]  ;;  %v810_v44 = vld [vmem:[#allocation7 + $0xd0] sm:$0xff]  ;;  %s1036_s29 = sshll.u32 %s311_s18, 4  ;;  %s1717_s29 = int_to_ptr.vmem [resolvable:$true] %s1036_s29 }
  0x5b   : > { %v320_v6 = vld [vmem:[%s315_s27] sm:$0x3]  ;;  %v747_v46 = vld [vmem:[#allocation5 + $0xd8] sm:$0xff]  ;;  %v809_v47 = vld [vmem:[#allocation7 + $0xc8] sm:$0xff]  ;;  %s1023_s25 = scalar_lea.sflag [#allocation4], %s1633_s12  ;;  %s1381_s13 = scalar_lea.vmem %s1717_s29, 512 }
  0x5c   : > { %v325_v7 = vrot.slane %v320_v6, %v1649_v2  ;;  %v329_v8 = vrot.slane %v320_v6, %v328_v3  ;;  %v748_v45 = vld [vmem:[#allocation5 + $0xe0] sm:$0xff]  ;;  %v746_v48 = vld [vmem:[#allocation5 + $0xd0] sm:$0xff]  ;;  %v745_v50 = vld [vmem:[#allocation5 + $0xc8] sm:$0xff]  ;;  %p1382_p2 = scmp.ne.s32.totalorder %s1717_s29, %s1381_s13  ;;  %p1787_p7 = scmp.ne.s32.totalorder %s1779_s30, 0 }
  0x5d   : > { %v808_v49 = vld [vmem:[#allocation7 + $0xc0] sm:$0xff]  ;;  %v807_v51 = vld [vmem:[#allocation7 + $0xb8] sm:$0xff]  ;;  %v806_v53 = vld [vmem:[#allocation7 + $0xb0] sm:$0xff]  ;;  %s1459_s27 = smov [#allocation8]  }
  0x5e   : > { %v1664_v11 = vmul.f32 %v325_v7, %v1654_v4  ;;  %v1667_v12 = vmul.f32 %v329_v8, %v1656_v5  ;;  %v1670_v13 = vmul.f32 %v325_v7, %v1659_v9  ;;  %v1673_v14 = vmul.f32 %v329_v8, %v1661_v10  ;;  %v744_v52 = vld [vmem:[#allocation5 + $0xc0] sm:$0xff]  ;;  %v743_v54 = vld [vmem:[#allocation5 + $0xb8] sm:$0xff]  ;;  %v805_v55 = vld [vmem:[#allocation7 + $0xa8] sm:$0xff]  ;;  %p1383_p12 = pnand %p1382_p2, %p1787_p7  ;;  %s1385_s14 = sshll.u32 %s1459_s27, 4  ;;  %s1386_s14 = int_to_ptr.vmem [resolvable:$false] %s1385_s14 }
  0x5f   : > { %v742_v56 = vld [vmem:[#allocation5 + $0xb0] sm:$0xff]  ;;  %v804_v57 = vld [vmem:[#allocation7 + $0xa0] sm:$0xff]  ;;  %v741_v58 = vld [vmem:[#allocation5 + $0xa8] sm:$0xff]  ;;  %s1387_s16 = scalar_lea.vmem %s1386_s14, 1024  ;;  %p1388_p0 = scmp.lt.s32.totalorder %s1717_s29, %s1386_s14 }
  0x60   : > { %v347_v15 = vmax.f32 %v1664_v11, %v1667_v12  ;;  %v339_v16 = vadd.f32 %v1667_v12, %v1664_v11  ;;  %v344_v17 = vmax.f32 %v1670_v13, %v1673_v14  ;;  %v336_v18 = vadd.f32 %v1673_v14, %v1670_v13  ;;  %v803_v59 = vld [vmem:[#allocation7 + $0x98] sm:$0xff]  ;;  %v740_v60 = vld [vmem:[#allocation5 + $0xa0] sm:$0xff]  ;;  %v802_v61 = vld [vmem:[#allocation7 + $0x90] sm:$0xff]  ;;  %p1384_p13 = pneg %p1383_p12  ;;  %p1389_p10 = scmp.lt.s32.totalorder %s1387_s16, %s1381_s13 }
  0x61   : > { %v739_v62 = vld [vmem:[#allocation5 + $0x98] sm:$0xff]  ;;  %v801_v63 = vld [vmem:[#allocation7 + $0x88] sm:$0xff]  ;;  %v738_v0 = vld [vmem:[#allocation5 + $0x90] sm:$0xff] }
  0x62   : > { %348 = vmax.xlane.f32.xlu1 %v347_v15  ;;  %340 = vadd.xlane.f32.xlu0 %v339_v16  ;;  %v800_v1 = vld [vmem:[#allocation7 + $0x80] sm:$0xff]  ;;  %v737_v3 = vld [vmem:[#allocation5 + $0x88] sm:$0xff]  ;;  %v799_v6 = vld [vmem:[#allocation7 + $0x78] sm:$0xff]  ;;  %p1390_p3 = por %p1389_p10, %p1388_p0 }
  0x63   : > { %v736_v7 = vld [vmem:[#allocation5 + $0x80] sm:$0xff]  ;;  %v798_v8 = vld [vmem:[#allocation7 + $0x70] sm:$0xff]  ;;  %v735_v15 = vld [vmem:[#allocation5 + $0x78] sm:$0xff] }
  0x64   : > { %v797_v16 = vld [vmem:[#allocation7 + $0x68] sm:$0xff]  ;;  %p1391_p11 = pnand %p1390_p3, %p1384_p13 }
  0x65   : > { %v725_v35 = vld [vmem:[#allocation5 + $0x28] sm:$0xff] }
  0x66   : > { %345 = vmax.xlane.f32.xlu1 %v344_v17  ;;  %337 = vadd.xlane.f32.xlu0 %v336_v18  ;;  %v734_v17 = vld [vmem:[#allocation5 + $0x70] sm:$0xff]  ;;  %v796_v18 = vld [vmem:[#allocation7 + $0x60] sm:$0xff] }
  0xeb   : > { %v349_v20 = vpop.xlane.xlu1 %348  ;;  %v341_v21 = vpop.xlane.xlu0 %340 }
  0xec   : > { %v343_v22 = vmul.f32 0.00390625, %v341_v21  ;;  %1193 = vmatpush3.msra.mxu1 %v349_v20  ;;  %v795_v20 = vld [vmem:[#allocation7 + $0x58] sm:$0xff]  ;;  %v732_v21 = vld [vmem:[#allocation5 + $0x60] sm:$0xff] }
  0xed   : > { %1194 = vmatprep.subr.mxu1 %v1456_v19 }
  0xee   : > { %1186 = vmatpush3.msra.mxu0 %v343_v22  ;;  %v794_v22 = vld [vmem:[#allocation7 + $0x50] sm:$0xff] }
  0xef   : > { %v346_v24 = vpop.xlane.xlu1 %345  ;;  %v338_v25 = vpop.xlane.xlu0 %337  ;;  %1187 = vmatprep.subr.mxu0 %v1456_v19  ;;  %v733_v19 = vld [vmem:[#allocation5 + $0x68] sm:$0xff] }
  0xf0   : > { %v342_v26 = vmul.f32 0.00390625, %v338_v25  ;;  %1195 = vmatpush3.msra.mxu1 %v346_v24  ;;  %v793_v24 = vld [vmem:[#allocation7 + $0x48] sm:$0xff]  ;;  %v730_v25 = vld [vmem:[#allocation5 + $0x50] sm:$0xff] }
  0xf1   : > { %1197 = vmatmul.mubr.msk.f32.vlgmr.msra.gmra.mxu1 %vm353_vm1, %v350_v23 }
  0xf2   : > { %1188 = vmatpush3.msra.mxu0 %v342_v26  ;;  %1206 = vmatprep.mubr.msk.f32.mxu1 %vm499_vm2, %v351_v27  ;;  %v792_v26 = vld [vmem:[#allocation7 + $0x40] sm:$0xff] }
  0xf3   : > { %1190 = vmatmul.mubr.msk.f32.vlgmr.msra.gmra.mxu0 %vm353_vm1, %v350_v23  ;;  %v731_v23 = vld [vmem:[#allocation5 + $0x58] sm:$0xff] }
  0xf4   : > { %1201 = vmatprep.mubr.msk.f32.mxu0 %vm499_vm2, %v351_v27  ;;  %v729_v27 = vld [vmem:[#allocation5 + $0x48] sm:$0xff] }
 0x1b1   : > { %v494_v28 = vpop.f32.mrf.mxu1 }
 0x1b2   : > { %v498_v29 = vmax.f32 %v494_v28, 0.0  ;;  %v791_v28 = vld [vmem:[#allocation7 + $0x38] sm:$0xff] }
 0x1b3   : > { %v423_v30 = vpop.f32.mrf.mxu0  ;;  %v1198_v31 = vpop.f32.mrf.mxu1 }
 0x1b4   : > { %v427_v33 = vmax.f32 %v423_v30, 0.0  ;;  %1199 = vmatprep.subr.msk.mxu0 %vm506_vm3, %v498_v29  ;;  %v790_v30 = vld [vmem:[#allocation7 + $0x30] sm:$0xff]  ;;  %v727_v31 = vld [vmem:[#allocation5 + $0x38] sm:$0xff] }
 0x1b5   : > { %v1191_v34 = vpop.f32.mrf.mxu0  ;;  %1200 = vmatpush3.msk.msra.mxu0 %vm506_vm3, %v498_v29  ;;  %v728_v29 = vld [vmem:[#allocation5 + $0x40] sm:$0xff] }
 0x1b6   : > { %1204 = vmatprep.subr.msk.mxu1 %vm506_vm3, %v427_v33  ;;  %1202 = vmatmul.mubr.msk.f32.vlgmr.msra.gmra.mxu0 %vm499_vm2, %v352_v32  ;;  %v788_v34 = vld [vmem:[#allocation7 + $0x20] sm:$0xff] }
 0x1b7   : > { %1205 = vmatpush3.msk.msra.mxu1 %vm506_vm3, %v427_v33  ;;  %848 = vmatprep.subr.mxu0 %v815_v36  ;;  %v726_v33 = vld [vmem:[#allocation5 + $0x30] sm:$0xff]  ;;  %v787_v36 = vld [vmem:[#allocation7 + $0x18] sm:$0xff] }
 0x1b8   : > { %1207 = vmatmul.mubr.msk.f32.vlgmr.msra.gmra.mxu1 %vm499_vm2, %v352_v32  ;;  %849 = vmatpush1.msra.mxu0 %v814_v37  ;;  %v789_v32 = vld [vmem:[#allocation7 + $0x28] sm:$0xff]  ;;  %v724_v37 = vld [vmem:[#allocation5 + $0x20] sm:$0xff] }
 0x1b9   : > { %919 = vmatprep.subr.mxu1 %v751_v39  ;;  %850 = vmatprep.subr.mxu0 %v813_v38  ;;  %v786_v38 = vld [vmem:[#allocation7 + $0x10] sm:$0xff]  ;;  %v723_v39 = vld [vmem:[#allocation5 + $0x18] sm:$0xff] }
 0x1ba   : > { %920 = vmatpush1.msra.mxu1 %v750_v41  ;;  %851 = vmatpush1.msra.mxu0 %v812_v40  ;;  %v785_v40 = vld [vmem:[#allocation7 + $0x8] sm:$0xff]  ;;  %v722_v41 = vld [vmem:[#allocation5 + $0x10] sm:$0xff] }
 0x1bb   : > { %921 = vmatprep.subr.mxu1 %v749_v43  ;;  %852 = vmatprep.subr.mxu0 %v811_v42  ;;  %v784_v42 = vld [vmem:[#allocation7] sm:$0xff]  ;;  %v721_v43 = vld [vmem:[#allocation5 + $0x8] sm:$0xff] }
 0x1bc   : > { %922 = vmatpush1.msra.mxu1 %v748_v45  ;;  %853 = vmatpush1.msra.mxu0 %v810_v44  ;;  %v847_v44 = vld [vmem:[#allocation7 + $0x1f8] sm:$0xff]  ;;  %v720_v45 = vld [vmem:[#allocation5] sm:$0xff] }
 0x1bd   : > { %923 = vmatprep.subr.mxu1 %v747_v46  ;;  %854 = vmatprep.subr.mxu0 %v809_v47  ;;  %v846_v46 = vld [vmem:[#allocation7 + $0x1f0] sm:$0xff]  ;;  %v783_v47 = vld [vmem:[#allocation5 + $0x1f8] sm:$0xff] }
 0x1be   : > { %924 = vmatpush1.msra.mxu1 %v746_v48  ;;  %855 = vmatpush1.msra.mxu0 %v808_v49  ;;  %v845_v48 = vld [vmem:[#allocation7 + $0x1e8] sm:$0xff]  ;;  %v782_v49 = vld [vmem:[#allocation5 + $0x1f0] sm:$0xff] }
 0x1bf   : > { %925 = vmatprep.subr.mxu1 %v745_v50  ;;  %856 = vmatprep.subr.mxu0 %v807_v51  ;;  %v844_v50 = vld [vmem:[#allocation7 + $0x1e0] sm:$0xff]  ;;  %v781_v51 = vld [vmem:[#allocation5 + $0x1e8] sm:$0xff] }
 0x1c0   : > { %926 = vmatpush1.msra.mxu1 %v744_v52  ;;  %857 = vmatpush1.msra.mxu0 %v806_v53  ;;  %v843_v52 = vld [vmem:[#allocation7 + $0x1d8] sm:$0xff]  ;;  %v780_v53 = vld [vmem:[#allocation5 + $0x1e0] sm:$0xff] }
 0x1c1   : > { %927 = vmatprep.subr.mxu1 %v743_v54  ;;  %858 = vmatprep.subr.mxu0 %v805_v55  ;;  %v842_v54 = vld [vmem:[#allocation7 + $0x1d0] sm:$0xff]  ;;  %v779_v55 = vld [vmem:[#allocation5 + $0x1d8] sm:$0xff] }
 0x1c2   : > { %928 = vmatpush1.msra.mxu1 %v742_v56  ;;  %859 = vmatpush1.msra.mxu0 %v804_v57  ;;  %v841_v56 = vld [vmem:[#allocation7 + $0x1c8] sm:$0xff]  ;;  %v778_v57 = vld [vmem:[#allocation5 + $0x1d0] sm:$0xff] }
 0x1c3   : > { %929 = vmatprep.subr.mxu1 %v741_v58  ;;  %860 = vmatprep.subr.mxu0 %v803_v59  ;;  %v840_v58 = vld [vmem:[#allocation7 + $0x1c0] sm:$0xff]  ;;  %v777_v59 = vld [vmem:[#allocation5 + $0x1c8] sm:$0xff] }
 0x1c4   : > { %930 = vmatpush1.msra.mxu1 %v740_v60  ;;  %861 = vmatpush1.msra.mxu0 %v802_v61  ;;  %v839_v60 = vld [vmem:[#allocation7 + $0x1b8] sm:$0xff]  ;;  %v776_v61 = vld [vmem:[#allocation5 + $0x1c0] sm:$0xff] }
 0x1c5   : > { %931 = vmatprep.subr.mxu1 %v739_v62  ;;  %862 = vmatprep.subr.mxu0 %v801_v63  ;;  %v838_v62 = vld [vmem:[#allocation7 + $0x1b0] sm:$0xff]  ;;  %v775_v63 = vld [vmem:[#allocation5 + $0x1b8] sm:$0xff] }
 0x1c6   : > { %932 = vmatpush1.msra.mxu1 %v738_v0  ;;  %863 = vmatpush1.msra.mxu0 %v800_v1  ;;  %v837_v0 = vld [vmem:[#allocation7 + $0x1a8] sm:$0xff]  ;;  %v774_v1 = vld [vmem:[#allocation5 + $0x1b0] sm:$0xff] }
 0x1c7   : > { %933 = vmatprep.subr.mxu1 %v737_v3  ;;  %864 = vmatprep.subr.mxu0 %v799_v6  ;;  %v836_v3 = vld [vmem:[#allocation7 + $0x1a0] sm:$0xff]  ;;  %v773_v6 = vld [vmem:[#allocation5 + $0x1a8] sm:$0xff] }
 0x1c8   : > { %934 = vmatpush1.msra.mxu1 %v736_v7  ;;  %865 = vmatpush1.msra.mxu0 %v798_v8  ;;  %v835_v7 = vld [vmem:[#allocation7 + $0x198] sm:$0xff]  ;;  %v772_v8 = vld [vmem:[#allocation5 + $0x1a0] sm:$0xff] }
 0x1c9   : > { %935 = vmatprep.subr.mxu1 %v735_v15  ;;  %866 = vmatprep.subr.mxu0 %v797_v16  ;;  %v834_v15 = vld [vmem:[#allocation7 + $0x190] sm:$0xff]  ;;  %v771_v16 = vld [vmem:[#allocation5 + $0x198] sm:$0xff] }
 0x1ca   : > { %936 = vmatpush1.msra.mxu1 %v734_v17  ;;  %867 = vmatpush1.msra.mxu0 %v796_v18  ;;  %v833_v17 = vld [vmem:[#allocation7 + $0x188] sm:$0xff] }
 0x1cb   : > { %937 = vmatprep.subr.mxu1 %v733_v19  ;;  %868 = vmatprep.subr.mxu0 %v795_v20 }
 0x1cc   : > { %938 = vmatpush1.msra.mxu1 %v732_v21  ;;  %869 = vmatpush1.msra.mxu0 %v794_v22 }
 0x1cd   : > { %939 = vmatprep.subr.mxu1 %v731_v23  ;;  %870 = vmatprep.subr.mxu0 %v793_v24 }
 0x1ce   : > { %940 = vmatpush1.msra.mxu1 %v730_v25  ;;  %871 = vmatpush1.msra.mxu0 %v792_v26 }
 0x1cf   : > { %941 = vmatprep.subr.mxu1 %v729_v27  ;;  %872 = vmatprep.subr.mxu0 %v791_v28 }
 0x1d0   : > { %942 = vmatpush1.msra.mxu1 %v728_v29  ;;  %873 = vmatpush1.msra.mxu0 %v790_v30  ;;  %v832_v30 = vld [vmem:[#allocation7 + $0x180] sm:$0xff] }
 0x1d1   : > { %943 = vmatprep.subr.mxu1 %v727_v31  ;;  %874 = vmatprep.subr.mxu0 %v789_v32  ;;  %v770_v31 = vld [vmem:[#allocation5 + $0x190] sm:$0xff]  ;;  %v831_v32 = vld [vmem:[#allocation7 + $0x178] sm:$0xff] }
 0x1d2   : > { %944 = vmatpush1.msra.mxu1 %v726_v33  ;;  %875 = vmatpush1.msra.mxu0 %v788_v34  ;;  %v769_v33 = vld [vmem:[#allocation5 + $0x188] sm:$0xff] }
 0x1d3   : > { %945 = vmatprep.subr.mxu1 %v725_v35  ;;  %876 = vmatprep.subr.mxu0 %v787_v36  ;;  %v830_v35 = vld [vmem:[#allocation7 + $0x170] sm:$0xff]  ;;  %v768_v36 = vld [vmem:[#allocation5 + $0x180] sm:$0xff] }
 0x1d4   : > { %946 = vmatpush1.msra.mxu1 %v724_v37  ;;  %877 = vmatpush1.msra.mxu0 %v786_v38  ;;  %v829_v37 = vld [vmem:[#allocation7 + $0x168] sm:$0xff]  ;;  %v767_v38 = vld [vmem:[#allocation5 + $0x178] sm:$0xff] }
 0x1d5   : > { %947 = vmatprep.subr.mxu1 %v723_v39  ;;  %878 = vmatprep.subr.mxu0 %v785_v40  ;;  %v828_v40 = vld [vmem:[#allocation7 + $0x160] sm:$0xff] }
 0x1d6   : > { %948 = vmatpush1.msra.mxu1 %v722_v41  ;;  %879 = vmatpush1.msra.mxu0 %v784_v42  ;;  %v766_v41 = vld [vmem:[#allocation5 + $0x170] sm:$0xff]  ;;  %v827_v42 = vld [vmem:[#allocation7 + $0x158] sm:$0xff] }
 0x1d7   : > { %949 = vmatprep.subr.mxu1 %v721_v43  ;;  %880 = vmatprep.subr.mxu0 %v847_v44  ;;  %v765_v43 = vld [vmem:[#allocation5 + $0x168] sm:$0xff]  ;;  %v826_v44 = vld [vmem:[#allocation7 + $0x150] sm:$0xff] }
 0x1d8   : > { %950 = vmatpush1.msra.mxu1 %v720_v45  ;;  %881 = vmatpush2.msra.mxu0 %v846_v46  ;;  %v764_v45 = vld [vmem:[#allocation5 + $0x160] sm:$0xff]  ;;  %v825_v46 = vld [vmem:[#allocation7 + $0x148] sm:$0xff] }
 0x1d9   : > { %951 = vmatprep.subr.mxu1 %v783_v47  ;;  %882 = vmatprep.subr.mxu0 %v845_v48  ;;  %v763_v47 = vld [vmem:[#allocation5 + $0x158] sm:$0xff]  ;;  %v824_v48 = vld [vmem:[#allocation7 + $0x140] sm:$0xff] }
 0x1da   : > { %952 = vmatpush2.msra.mxu1 %v782_v49  ;;  %883 = vmatpush2.msra.mxu0 %v844_v50  ;;  %v762_v49 = vld [vmem:[#allocation5 + $0x150] sm:$0xff]  ;;  %v823_v50 = vld [vmem:[#allocation7 + $0x138] sm:$0xff] }
 0x1db   : > { %953 = vmatprep.subr.mxu1 %v781_v51  ;;  %884 = vmatprep.subr.mxu0 %v843_v52  ;;  %v761_v51 = vld [vmem:[#allocation5 + $0x148] sm:$0xff]  ;;  %v822_v52 = vld [vmem:[#allocation7 + $0x130] sm:$0xff] }
 0x1dc   : > { %954 = vmatpush2.msra.mxu1 %v780_v53  ;;  %885 = vmatpush2.msra.mxu0 %v842_v54  ;;  %v760_v53 = vld [vmem:[#allocation5 + $0x140] sm:$0xff]  ;;  %v821_v54 = vld [vmem:[#allocation7 + $0x128] sm:$0xff] }
 0x1dd   : > { %955 = vmatprep.subr.mxu1 %v779_v55  ;;  %886 = vmatprep.subr.mxu0 %v841_v56  ;;  %v759_v55 = vld [vmem:[#allocation5 + $0x138] sm:$0xff]  ;;  %v820_v56 = vld [vmem:[#allocation7 + $0x120] sm:$0xff] }
 0x1de   : > { %956 = vmatpush2.msra.mxu1 %v778_v57  ;;  %887 = vmatpush2.msra.mxu0 %v840_v58  ;;  %v758_v57 = vld [vmem:[#allocation5 + $0x130] sm:$0xff]  ;;  %v819_v58 = vld [vmem:[#allocation7 + $0x118] sm:$0xff] }
 0x1df   : > { %957 = vmatprep.subr.mxu1 %v777_v59  ;;  %888 = vmatprep.subr.mxu0 %v839_v60  ;;  %v757_v59 = vld [vmem:[#allocation5 + $0x128] sm:$0xff]  ;;  %v818_v60 = vld [vmem:[#allocation7 + $0x110] sm:$0xff] }
 0x1e0   : > { %958 = vmatpush2.msra.mxu1 %v776_v61  ;;  %889 = vmatpush2.msra.mxu0 %v838_v62  ;;  %v756_v61 = vld [vmem:[#allocation5 + $0x120] sm:$0xff]  ;;  %v817_v62 = vld [vmem:[#allocation7 + $0x108] sm:$0xff] }
 0x1e1   : > { %959 = vmatprep.subr.mxu1 %v775_v63  ;;  %890 = vmatprep.subr.mxu0 %v837_v0  ;;  %v755_v63 = vld [vmem:[#allocation5 + $0x118] sm:$0xff]  ;;  %v816_v0 = vld [vmem:[#allocation7 + $0x100] sm:$0xff] }
 0x1e2   : > { %960 = vmatpush2.msra.mxu1 %v774_v1  ;;  %891 = vmatpush2.msra.mxu0 %v836_v3  ;;  %v754_v1 = vld [vmem:[#allocation5 + $0x110] sm:$0xff]  ;;  %v753_v3 = vld [vmem:[#allocation5 + $0x108] sm:$0xff] }
 0x1e3   : > { %961 = vmatprep.subr.mxu1 %v773_v6  ;;  %892 = vmatprep.subr.mxu0 %v835_v7  ;;  %v752_v6 = vld [vmem:[#allocation5 + $0x100] sm:$0xff] }
 0x1e4   : > { %962 = vmatpush2.msra.mxu1 %v772_v8  ;;  %893 = vmatpush2.msra.mxu0 %v834_v15 }
 0x1e5   : > { %963 = vmatprep.subr.mxu1 %v771_v16  ;;  %894 = vmatprep.subr.mxu0 %v833_v17 }
 0x1e6   : > { %895 = vmatpush2.msra.mxu0 %v832_v30  ;;  %964 = vmatpush2.msra.mxu1 %v770_v31 }
 0x1e7   : > { %896 = vmatprep.subr.mxu0 %v831_v32  ;;  %965 = vmatprep.subr.mxu1 %v769_v33 }
 0x1e8   : > { %897 = vmatpush2.msra.mxu0 %v830_v35  ;;  %966 = vmatpush2.msra.mxu1 %v768_v36 }
 0x1e9   : > { %898 = vmatprep.subr.mxu0 %v829_v37  ;;  %967 = vmatprep.subr.mxu1 %v767_v38 }
 0x1ea   : > { %899 = vmatpush2.msra.mxu0 %v828_v40  ;;  %968 = vmatpush2.msra.mxu1 %v766_v41 }
 0x1eb   : > { %900 = vmatprep.subr.mxu0 %v827_v42  ;;  %969 = vmatprep.subr.mxu1 %v765_v43 }
 0x1ec   : > { %901 = vmatpush2.msra.mxu0 %v826_v44  ;;  %970 = vmatpush2.msra.mxu1 %v764_v45 }
 0x1ed   : > { %902 = vmatprep.subr.mxu0 %v825_v46  ;;  %971 = vmatprep.subr.mxu1 %v763_v47 }
 0x1ee   : > { %903 = vmatpush2.msra.mxu0 %v824_v48  ;;  %972 = vmatpush2.msra.mxu1 %v762_v49 }
 0x1ef   : > { %904 = vmatprep.subr.mxu0 %v823_v50  ;;  %973 = vmatprep.subr.mxu1 %v761_v51 }
 0x1f0   : > { %905 = vmatpush2.msra.mxu0 %v822_v52  ;;  %974 = vmatpush2.msra.mxu1 %v760_v53 }
 0x1f1   : > { %906 = vmatprep.subr.mxu0 %v821_v54  ;;  %975 = vmatprep.subr.mxu1 %v759_v55 }
 0x1f2   : > { %907 = vmatpush2.msra.mxu0 %v820_v56  ;;  %976 = vmatpush2.msra.mxu1 %v758_v57 }
 0x1f3   : > { %908 = vmatprep.subr.mxu0 %v819_v58  ;;  %977 = vmatprep.subr.mxu1 %v757_v59 }
 0x1f4   : > { %909 = vmatpush2.msra.mxu0 %v818_v60  ;;  %978 = vmatpush2.msra.mxu1 %v756_v61 }
 0x1f5   : > { %910 = vmatprep.subr.mxu0 %v817_v62  ;;  %979 = vmatprep.subr.mxu1 %v755_v63 }
 0x1f6   : > { %911 = vmatpush2.msra.mxu0 %v816_v0  ;;  %980 = vmatpush2.msra.mxu1 %v754_v1 }
 0x1f7   : > { %981 = vmatprep.subr.mxu1 %v753_v3 }
 0x1f8   : > { %982 = vmatpush2.msra.mxu1 %v752_v6 }
 0x276   : > { %v1203_v18 = vpop.f32.mrf.mxu0 }
 0x278   : > { %v1208_v19 = vpop.f32.mrf.mxu1  ;;  %v576_v21 = vpop.f32.mrf.mxu0 }
 0x279   : > { %v660_v20 = vadd.f32 %v1208_v19, %v1203_v18 }
 0x27a   : > { %v654_v22 = vpop.f32.mrf.mxu1 }
 0x27b   : > { %v1163_v23 = vmul.f32 -1.442695, %v660_v20  ;;  %v655_v24 = vadd.f32 %v654_v22, %v576_v21 }
 0x27d   : > { %1285 = vpow2.f32 %v1163_v23  ;;  %v1162_v25 = vmul.f32 -1.442695, %v655_v24 }
 0x27f   : > { %1287 = vpow2.f32 %v1162_v25 }
 0x28a   : > { %v1286_v26 = vpop.eup %1285 }
 0x28b   : > { %v670_v27 = vadd.f32 1.0, %v1286_v26 }
 0x28c   : > { %v1288_v28 = vpop.eup %1287 }
 0x28d   : > { %1289 = vrcp.f32 %v670_v27  ;;  %v669_v29 = vadd.f32 1.0, %v1288_v28 }
 0x28f   : > { %1291 = vrcp.f32 %v669_v29 }
 0x29a   : > { %v1290_v34 = vpop.eup %1289 }
 0x29b   : > { %682 = vperm.xlu1 %1284, %v1290_v34  }
 0x29c   : > { %v1292_v39 = vpop.eup %1291 }
 0x29d   : > { %677 = vperm.xlu0 %1283, %v1292_v39  }
 0x316   : > { %v683_v7 = vpop.permute.xlu1 %682 }
 0x317   : > { %v687_v15 = vmul.f32 %v683_v7, %v1664_v11  ;;  %v1698_v16 = vmul.f32 %v683_v7, %v1667_v12 }
 0x318   : > { %v678_v8 = vpop.permute.xlu0 %677 }
 0x319   : > { %v685_v17 = vmul.f32 %v678_v8, %v1670_v13  ;;  %v686_v18 = vmul.f32 %v678_v8, %v1673_v14 }
 0x31b   : > { %v689_v19 = vadd.f32 %v687_v15, %v685_v17  ;;  %v696_v20 = vadd.f32 %v1698_v16, %v686_v18  ;;  %v706_v21 = vmax.f32 %v685_v17, %v687_v15  ;;  %v713_v22 = vmax.f32 %v686_v18, %v1698_v16 }
 0x31d   : > { %v690_v23 = vrot.slane %v689_v19, 4  ;;  %v697_v24 = vrot.slane %v696_v20, 4  ;;  %v707_v25 = vrot.slane %v706_v21, 4  ;;  %v714_v26 = vrot.slane %v713_v22, 4 }
 0x31f   : > { %v691_v27 = vadd.f32 %v690_v23, %v689_v19  ;;  %v698_v28 = vadd.f32 %v697_v24, %v696_v20  ;;  %v708_v11 = vmax.f32 %v706_v21, %v707_v25  ;;  %v715_v29 = vmax.f32 %v713_v22, %v714_v26 }
 0x321   : > { %v692_v12 = vrot.slane %v691_v27, 2  ;;  %v709_v30 = vrot.slane %v708_v11, 2  ;;  %v716_v31 = vrot.slane %v715_v29, 2  ;;  %v699_v13 = vrot.slane %v698_v28, 2 }
 0x323   : > { %v693_v32 = vadd.f32 %v692_v12, %v691_v27  ;;  %v710_v14 = vmax.f32 %v708_v11, %v709_v30  ;;  %v717_v33 = vmax.f32 %v715_v29, %v716_v31  ;;  %v700_v34 = vadd.f32 %v699_v13, %v698_v28 }
 0x325   : > { %v718_v35 = vrot.slane %v717_v33, 1  ;;  %v711_v36 = vrot.slane %v710_v14, 1  ;;  %v701_v37 = vrot.slane %v700_v34, 1  ;;  %v694_v38 = vrot.slane %v693_v32, 1 }
 0x327   : > { %v719_v39 = vmax.f32 %v717_v33, %v718_v35  ;;  %v712_v40 = vmax.f32 %v710_v14, %v711_v36  ;;  %v702_v41 = vadd.f32 %v701_v37, %v700_v34  ;;  %v695_v42 = vadd.f32 %v694_v38, %v693_v32 }
 0x329   : > { %912 = vmatprep.mubr.f32.mxu0 %v719_v39  ;;  %v705_v43 = vmul.f32 0.0625, %v702_v41  ;;  %v704_v44 = vmul.f32 0.0625, %v695_v42 }
 0x32a   : > { %913 = vmatmul.mubr.f32.vlgmr.msra.gmra.mxu0 %v712_v40 }
 0x32b   : > { %983 = vmatprep.mubr.f32.mxu1 %v705_v43 }
 0x32c   : > { %984 = vmatmul.mubr.f32.vlgmr.msra.gmra.mxu1 %v704_v44 }
 0x3ea   : > { %v914_v45 = vpop.f32.mrf.mxu0 }
 0x3ec   : > { %v985_v46 = vpop.f32.mrf.mxu1  ;;  %v916_v48 = vpop.f32.mrf.mxu0 }
 0x3ed   : > { %v986_v47 = vadd.f32 %v985_v46, %v914_v45 }
 0x3ee   : > { %v987_v49 = vpop.f32.mrf.mxu1 }
 0x3ef   : > { %v1164_v50 = vmul.f32 -1.442695, %v986_v47  ;;  %v988_v51 = vadd.f32 %v987_v49, %v916_v48 }
 0x3f1   : > { %1293 = vpow2.f32 %v1164_v50  ;;  %v1165_v52 = vmul.f32 -1.442695, %v988_v51 }
 0x3f3   : > { %1295 = vpow2.f32 %v1165_v52 }
 0x3fe   : > { %v1294_v53 = vpop.eup %1293 }
 0x3ff   : > { %v996_v54 = vadd.f32 1.0, %v1294_v53 }
 0x400   : > { %v1296_v55 = vpop.eup %1295 }
 0x401   : > { %1297 = vrcp.f32 %v996_v54  ;;  %v997_v56 = vadd.f32 1.0, %v1296_v55 }
 0x403   : > { %1299 = vrcp.f32 %v997_v56 }
 0x40e   : > { %v1298_v57 = vpop.eup %1297 }
 0x40f   : > { %v1005_v58 = vrot.slane %v1298_v57, %v1649_v2 }
 0x410   : > { %v1300_v59 = vpop.eup %1299 }
 0x411   : > { %v1010_v60 = vmul.f32 %v1005_v58, %v685_v17  ;;  %v1012_v61 = vmul.f32 %v1005_v58, %v687_v15  ;;  %v1009_v62 = vrot.slane %v1300_v59, %v1649_v2 }
 0x413   : > { %v1014_v63 = vmul.f32 %v1010_v60, %v1659_v9  ;;  %v1016_v0 = vmul.f32 %v1012_v61, %v1654_v4  ;;  %v1011_v1 = vmul.f32 %v1009_v62, %v686_v18  ;;  %v1013_v3 = vmul.f32 %v1009_v62, %v1698_v16 }
 0x415   : > { %v1015_v2 = vmul.f32 %v1011_v1, %v1661_v10  ;;  %v1017_v6 = vmul.f32 %v1013_v3, %v1656_v5  ;;  %1018 = vst [vmem:[%s311_s18] sm:$0xff] %v1014_v63  ;;  %1020 = vst [vmem:[%s311_s18 + $0x10] sm:$0xff] %v1016_v0 }
 0x417   : > { %1019 = vst [vmem:[%s311_s18 + $0x8] sm:$0xff] %v1015_v2  ;;  %1021 = vst [vmem:[%s311_s18 + $0x18] sm:$0xff] %v1017_v6 }
 0x418   : > { %1394 = shalt.err (!%p1391_p11)
}
 0x419   : > { %s1395_s8 = scalar_lea.hbm %s1715_s20, 512  ;;  %s1399_s11 = scalar_lea.hbm %s1768_s6, 1024 }
 0x41a   : > { %p1396_p9 = scmp.ne.s32.totalorder %s1715_s20, %s1395_s8  ;;  %p1400_p6 = scmp.lt.s32.totalorder %s1715_s20, %s1768_s6 }
 0x41b   : > { %p1401_p8 = scmp.lt.s32.totalorder %s1399_s11, %s1395_s8 }
 0x41c   : > { %p1397_p1 = pnand %p1396_p9, %p1787_p7 }
 0x41d   : > { %p1402_p5 = por %p1401_p8, %p1400_p6 }
 0x41e   : > { %p1398_p4 = pneg %p1397_p1 }
 0x420   : > { %p1403_p2 = pnand %p1402_p5, %p1398_p4 }
 0x422   : > { %1406 = shalt.err (!%p1403_p2)
}
 0x423   : > { %s1460_s15 = smov 256   ;;  %s1461_s17 = smov 16  }
 0x424   : > { %1219 = dma.vmem_to_hbm [thread:$0]  (%p1787_p7), %s1717_s29, 512, %s1715_s20, %s1023_s25, %s1460_s15, %s1460_s15, %s1461_s17  }
 0x425 PF: > { %s1051_s13 = sand.u32 1, %s1437_s21   ;;  %p1788_p12 = scmp.ne.s32.totalorder %s1776_s28, 0 }
 0x426   : > { %p1789_p13 = scmp.ge.s32.totalorder %s1449_s24, 2  ;;  %s1052_s27 = scalar_lea.sflag [#allocation4], %s1051_s13 }
 0x428   : > { %p1233_p0 = pnand %p1789_p13, %p1788_p12 }
 0x42a   : > { %p1234_p10 = pneg %p1233_p0 }
 0x42c   : > { %1432 = dma.done.wait (%p1234_p10), %s1052_s27, 512  }
 0x42d   : > { %1434 = vsyncadd (%p1234_p10), %s1052_s27, 4294966784  ;;  %p20_p3 = scmp.ge.s32.totalorder %s1575_s19, 4   ;;  %s1790_s21 = smov %s1441_s22 }
 0x42e   : > { %s1791_s22 = smov %s1445_s23  ;;  %s1792_s23 = smov %s1591_s7 }
 0x42f   : > { %s1793_s24 = smov %s1575_s19  ;;  %22 = sbr.rel (!%p20_p3) target bundleno = 6 (0x6), region = 100 }
 0x434   :  { %1057 = vsyncpa [#allocation3], 1 }
 0x435   :  { %1059 = vsyncpa [#allocation3 + $0x1], 1 }
 0x436   :  { %1060 = vsyncpa [#allocation6], 1 }
 0x437   :  { %1061 = vsyncpa [#allocation4], 1 }
 0x438   :  { %1063 = vsyncpa [#allocation4 + $0x1], 1 }

</bundles_post_ra>
